<compile_context>
chip_gen: v7x
topology: tpu7x:2x2x1
jax: 0.10.0
libtpu: 0.0.40
codegen_flags: <defaults>
</compile_context>

<pallas_src>
import jax
import jax.numpy as jnp
from jax import lax
from jax.experimental import pallas as pl
from jax.experimental.pallas import tpu as pltpu

_LANE = 128
_SUBLANE = 8
_H1 = 128   # hidden-1 width
_H2 = 64    # hidden-2 width (padded to _H1 lanes inside the kernel weights)


def _round_up(x, m):
    return (x + m - 1) // m * m


def _mlp_kernel(x_ref, w1_ref, b1_ref, w2_ref, b2_ref, w3t_ref, b3_ref, o_ref):
    """Fused 3-layer MLP on one batch tile.

    x_ref  : (TB, F)    f32  streamed batch tile (cast to bf16 here, in VMEM)
    w1_ref : (F, 128)   bf16 resident
    b1_ref : (1, 128)   f32  resident
    w2_ref : (128, 128) bf16 resident (cols 64..127 zero)
    b2_ref : (1, 128)   f32  resident (cols 64..127 zero)
    w3t_ref: (8, 128)   bf16 resident; row 0 = w3^T, rest zero
    b3_ref : (1,)       f32  SMEM scalar
    o_ref  : (1, 1, TB) f32  lane-packed output row for this tile
    """
    x = x_ref[...].astype(jnp.bfloat16)
    h1 = jnp.dot(x, w1_ref[...], preferred_element_type=jnp.float32)    # (TB,128)
    h1 = jnp.maximum(h1 + b1_ref[...], 0.0)
    # Dropout(0.3): identity in eval mode.
    h2 = jnp.dot(h1.astype(jnp.bfloat16), w2_ref[...],
                 preferred_element_type=jnp.float32)                    # (TB,128)
    h2 = jnp.maximum(h2 + b2_ref[...], 0.0)
    # Dropout(0.3): identity in eval mode.
    # Final layer directly in transposed layout: (8,128) @ (TB,128)^T -> (8,TB)
    # (the q @ k^T MXU pattern), so the per-row scalar result lands lane-dense
    # without an explicit transpose; row 0 is the real output, rows 1..7 zero.
    out8 = lax.dot_general(w3t_ref[...], h2.astype(jnp.bfloat16),
                           (((1,), (1,)), ((), ())),
                           preferred_element_type=jnp.float32)          # (8, TB)
    o_ref[...] = (out8[0:1, :] + b3_ref[0])[None].astype(o_ref.dtype)   # (1,1,TB)


def _choose_tb(batch, feat, tb_max):
    """Pick the batch-tile size.

    Goals: big tiles (amortize ~0.35us/grid-step overhead), >=2 grid steps for
    mid/large batches (v7x dual-TC sharding), and double-buffered x/out tiles
    within a VMEM buffer budget that also fits v7x (64 MiB physical VMEM).
    """
    b8 = _round_up(batch, _SUBLANE)
    feat_p = _round_up(feat, _LANE)            # lane padding of the x VMEM tile
    budget = 24 << 20
    cap = tb_max
    while cap > 256 and 2 * cap * (feat_p + _LANE) * 4 > budget:
        cap //= 2
    if b8 <= cap:
        if b8 <= 512:
            return batch                       # single tile == full array
        # Split into >=2 lane-aligned tiles so both v7x TensorCores get work.
        return min(cap, _round_up(pl.cdiv(batch, 2), _LANE))
    return cap


def regression_model_forward(x, params, *, tb_max=2048):
    """x: (B, input_size) f32. params: dict of w1,b1,w2,b2,w3,b3 with weights
    stored as (in, out) = transpose of PyTorch's (out, in). Returns (B, 1) f32."""
    B, F = x.shape
    TB = _choose_tb(B, F, tb_max)
    num_tiles = pl.cdiv(B, TB)

    # --- Resident operands (read once from HBM; tiny). ---
    w1 = params["w1"].astype(jnp.bfloat16)                               # (F, 128)
    b1 = params["b1"].reshape(1, _H1).astype(jnp.float32)
    w2 = jnp.zeros((_H1, _H1), jnp.bfloat16).at[:, :_H2].set(
        params["w2"].astype(jnp.bfloat16))                               # 64->128 cols
    b2 = jnp.zeros((1, _H1), jnp.float32).at[:, :_H2].set(
        params["b2"].reshape(1, _H2).astype(jnp.float32))
    w3t = jnp.zeros((_SUBLANE, _H1), jnp.bfloat16).at[0, :_H2].set(
        params["w3"].reshape(_H2).astype(jnp.bfloat16))                  # row 0 = w3^T
    b3 = params["b3"].reshape(1).astype(jnp.float32)                     # SMEM scalar

    # --- VMEM budget: double-buffered x/out tiles + resident weights. ---
    feat_p = _round_up(F, _LANE)
    tb_p = _round_up(TB, _LANE)
    buf_bytes = (2 * TB * feat_p * 4                      # x tiles (f32)
                 + 2 * _SUBLANE * tb_p * 4                # out tiles (f32)
                 + 2 * (feat_p * _H1 + _H1 * _H1 + _SUBLANE * _H1) * 2  # weights
                 + 2 * 2 * _H1 * 4)                       # biases
    vmem_limit = int(min(max(1.5 * buf_bytes + (4 << 20), 16 << 20), 40 << 20))
    # TODO(synk): for very wide input_size, add an "arbitrary" K grid axis over
    # the feature dim with an f32 accumulator instead of shrinking TB below 256.

    cost = pl.CostEstimate(
        flops=2 * B * (F * _H1 + _H1 * _H2 + _H2),
        transcendentals=0,
        bytes_accessed=(B * F * 4 + B * 4
                        + (F * _H1 + _H1 * _H2 + _H2) * 2
                        + (_H1 + _H2 + 1) * 4),
    )

    out_tiles = pl.pallas_call(
        _mlp_kernel,
        out_shape=jax.ShapeDtypeStruct((num_tiles, 1, TB), jnp.float32),
        grid=(num_tiles,),
        in_specs=[
            pl.BlockSpec((TB, F), lambda i: (i, 0)),            # x: streamed, unpadded
            pl.BlockSpec((F, _H1), lambda i: (0, 0)),           # w1 (resident)
            pl.BlockSpec((1, _H1), lambda i: (0, 0)),           # b1
            pl.BlockSpec((_H1, _H1), lambda i: (0, 0)),         # w2 (padded cols)
            pl.BlockSpec((1, _H1), lambda i: (0, 0)),           # b2 (padded cols)
            pl.BlockSpec((_SUBLANE, _H1), lambda i: (0, 0)),    # w3^T (row 0)
            pl.BlockSpec(memory_space=pltpu.MemorySpace.SMEM),  # b3 scalar
        ],
        out_specs=pl.BlockSpec((1, 1, TB), lambda i: (i, 0, 0)),
        compiler_params=pltpu.CompilerParams(
            dimension_semantics=("parallel",),
            vmem_limit_bytes=vmem_limit,
        ),
        cost_estimate=cost,
    )(x, w1, b1, w2, b2, w3t, b3)

    # (num_tiles, 1, TB) -> flat batch order; drop garbage rows written by the
    # partial edge tile (rows are fully independent, so discarding is safe).
    return out_tiles.reshape(-1)[:B].reshape(B, 1)


def init_params(input_size, key):
    """Deterministic init mirroring the PyTorch module's shapes
    (weights stored as (in, out) = transpose of PyTorch's (out, in))."""
    k1, k2, k3, k4, k5, k6 = jax.random.split(key, 6)

    def uniform_fan_in(k, shape, fan_in):
        bound = 1.0 / jnp.sqrt(float(fan_in))
        return jax.random.uniform(k, shape, jnp.float32, -bound, bound)

    return {
        "w1": uniform_fan_in(k1, (input_size, _H1), input_size),
        "b1": uniform_fan_in(k2, (1, _H1), input_size),
        "w2": uniform_fan_in(k3, (_H1, _H2), _H1),
        "b2": uniform_fan_in(k4, (1, _H2), _H1),
        "w3": uniform_fan_in(k5, (_H2, 1), _H2),
        "b3": uniform_fan_in(k6, (1, 1), _H2),
    }


def _reference_f32(x, p):
    h1 = jnp.maximum(x @ p["w1"] + p["b1"], 0.0)
    h2 = jnp.maximum(h1 @ p["w2"] + p["b2"], 0.0)
    return h2 @ p["w3"] + p["b3"]


def _reference_bf16(x, p):
    # Mirrors the kernel's numerics: bf16 matmul inputs, f32 accumulation.
    xb = x.astype(jnp.bfloat16)
    h1 = jnp.dot(xb, p["w1"].astype(jnp.bfloat16),
                 preferred_element_type=jnp.float32) + p["b1"]
    h1 = jnp.maximum(h1, 0.0)
    h2 = jnp.dot(h1.astype(jnp.bfloat16), p["w2"].astype(jnp.bfloat16),
                 preferred_element_type=jnp.float32) + p["b2"]
    h2 = jnp.maximum(h2, 0.0)
    return jnp.dot(h2.astype(jnp.bfloat16), p["w3"].astype(jnp.bfloat16),
                   preferred_element_type=jnp.float32) + p["b3"]


if __name__ == "__main__":
    key = jax.random.PRNGKey(0)
    kx1, kx2, kx3, kp = jax.random.split(key, 4)

    input_size = 32
    params = init_params(input_size, kp)

    # Case 1: tiny batch (single full-array tile).
    # Case 2: non-aligned batch (single tile, masked rows/lanes).
    # Case 3: larger batch -> 2 grid steps (dual-TC path) + partial edge tile.
    cases = [
        jax.random.normal(kx1, (8, input_size), jnp.float32),
        jax.random.normal(kx2, (300, input_size), jnp.float32),
        jax.random.normal(kx3, (1300, input_size), jnp.float32),
    ]

    for x in cases:
        out = jax.block_until_ready(regression_model_forward(x, params))
        assert out.shape == (x.shape[0], 1)

        # Tight check vs a reference with identical bf16-input / f32-accum numerics.
        ref_bf16 = _reference_bf16(x, params)
        assert jnp.allclose(out, ref_bf16, atol=2e-3, rtol=2e-3), (
            "mismatch vs bf16 reference")

        # Loose check vs the full-f32 PyTorch-equivalent forward.
        ref_f32 = _reference_f32(x, params)
        assert jnp.allclose(out, ref_f32, atol=5e-2, rtol=5e-2), (
            "mismatch vs f32 reference")

    print("KERNEL_OK")
</pallas_src>

<mosaic_0001>
module attributes {stable_mosaic.version = 11 : i64} {
  func.func @_mlp_kernel(%arg0: i32, %arg1: memref<8x32xf32, #tpu.memory_space<vmem>>, %arg2: memref<32x128xbf16, #tpu.memory_space<vmem>>, %arg3: memref<1x128xf32, #tpu.memory_space<vmem>>, %arg4: memref<128x128xbf16, #tpu.memory_space<vmem>>, %arg5: memref<1x128xf32, #tpu.memory_space<vmem>>, %arg6: memref<8x128xbf16, #tpu.memory_space<vmem>>, %arg7: memref<1xf32, #tpu.memory_space<smem>>, %arg8: memref<1x1x8xf32, #tpu.memory_space<vmem>>) attributes {dimension_semantics = [#tpu.dimension_semantics<parallel>], iteration_bounds = array<i64: 1>, scalar_prefetch = 0 : i64, scratch_operands = 0 : i64, tpu.core_type = #tpu.core_type<tc>, window_params = [{transform_indices = @transform_0, window_bounds = array<i64: 8, 32>}, {pipeline_mode = #tpu.pipeline_mode<synchronous>, transform_indices = @transform_1, window_bounds = array<i64: 32, 128>}, {pipeline_mode = #tpu.pipeline_mode<synchronous>, transform_indices = @transform_2, window_bounds = array<i64: 1, 128>}, {pipeline_mode = #tpu.pipeline_mode<synchronous>, transform_indices = @transform_3, window_bounds = array<i64: 128, 128>}, {pipeline_mode = #tpu.pipeline_mode<synchronous>, transform_indices = @transform_4, window_bounds = array<i64: 1, 128>}, {pipeline_mode = #tpu.pipeline_mode<synchronous>, transform_indices = @transform_5, window_bounds = array<i64: 8, 128>}, {transform_indices = @transform_6, window_bounds = array<i64: 1>}, {transform_indices = @transform_7, window_bounds = array<i64: 1, 1, 8>}]} {
    %c0 = arith.constant 0 : index
    %c0_0 = arith.constant 0 : index
    %0 = vector.load %arg1[%c0, %c0_0] : memref<8x32xf32, #tpu.memory_space<vmem>>, vector<8x32xf32>
    %1 = arith.truncf %0 : vector<8x32xf32> to vector<8x32xbf16>
    %c0_1 = arith.constant 0 : index
    %c0_2 = arith.constant 0 : index
    %2 = vector.load %arg2[%c0_1, %c0_2] : memref<32x128xbf16, #tpu.memory_space<vmem>>, vector<32x128xbf16>
    %cst = arith.constant dense<0.000000e+00> : vector<8x128xf32>
    %3 = tpu.matmul %1, %2, %cst {dimension_numbers = #tpu.dot_dimension_numbers<[1], [0], [0], [1], [0, 0, 1, 1], [], []>} : vector<8x32xbf16>, vector<32x128xbf16>, vector<8x128xf32> -> vector<8x128xf32>
    %c0_3 = arith.constant 0 : index
    %c0_4 = arith.constant 0 : index
    %4 = vector.load %arg3[%c0_3, %c0_4] : memref<1x128xf32, #tpu.memory_space<vmem>>, vector<1x128xf32>
    %5 = vector.broadcast %4 : vector<1x128xf32> to vector<8x128xf32>
    %6 = arith.addf %3, %5 : vector<8x128xf32>
    %cst_5 = arith.constant 0.000000e+00 : f32
    %7 = vector.broadcast %cst_5 : f32 to vector<8x128xf32>
    %8 = arith.maximumf %6, %7 : vector<8x128xf32>
    %9 = arith.truncf %8 : vector<8x128xf32> to vector<8x128xbf16>
    %c0_6 = arith.constant 0 : index
    %c0_7 = arith.constant 0 : index
    %10 = vector.load %arg4[%c0_6, %c0_7] : memref<128x128xbf16, #tpu.memory_space<vmem>>, vector<128x128xbf16>
    %cst_8 = arith.constant dense<0.000000e+00> : vector<8x128xf32>
    %11 = tpu.matmul %9, %10, %cst_8 {dimension_numbers = #tpu.dot_dimension_numbers<[1], [0], [0], [1], [0, 0, 1, 1], [], []>} : vector<8x128xbf16>, vector<128x128xbf16>, vector<8x128xf32> -> vector<8x128xf32>
    %c0_9 = arith.constant 0 : index
    %c0_10 = arith.constant 0 : index
    %12 = vector.load %arg5[%c0_9, %c0_10] : memref<1x128xf32, #tpu.memory_space<vmem>>, vector<1x128xf32>
    %13 = vector.broadcast %12 : vector<1x128xf32> to vector<8x128xf32>
    %14 = arith.addf %11, %13 : vector<8x128xf32>
    %cst_11 = arith.constant 0.000000e+00 : f32
    %15 = vector.broadcast %cst_11 : f32 to vector<8x128xf32>
    %16 = arith.maximumf %14, %15 : vector<8x128xf32>
    %c0_12 = arith.constant 0 : index
    %c0_13 = arith.constant 0 : index
    %17 = vector.load %arg6[%c0_12, %c0_13] : memref<8x128xbf16, #tpu.memory_space<vmem>>, vector<8x128xbf16>
    %18 = arith.truncf %16 : vector<8x128xf32> to vector<8x128xbf16>
    %cst_14 = arith.constant dense<0.000000e+00> : vector<8x8xf32>
    %19 = tpu.matmul %17, %18, %cst_14 {dimension_numbers = #tpu.dot_dimension_numbers<[1], [1], [0], [0], [0, 0, 1, 0], [], []>} : vector<8x128xbf16>, vector<8x128xbf16>, vector<8x8xf32> -> vector<8x8xf32>
    %20 = vector.extract_strided_slice %19 {offsets = [0, 0], sizes = [1, 8], strides = [1, 1]} : vector<8x8xf32> to vector<1x8xf32>
    %c0_15 = arith.constant 0 : index
    %21 = memref.load %arg7[%c0_15] : memref<1xf32, #tpu.memory_space<smem>>
    %22 = vector.broadcast %21 : f32 to vector<1x8xf32>
    %23 = arith.addf %20, %22 : vector<1x8xf32>
    %24 = vector.shape_cast %23 : vector<1x8xf32> to vector<1x1x8xf32>
    %c0_16 = arith.constant 0 : index
    %c0_17 = arith.constant 0 : index
    %c0_18 = arith.constant 0 : index
    %25 = vector.load %arg8[%c0_16, %c0_17, %c0_18] : memref<1x1x8xf32, #tpu.memory_space<vmem>>, vector<1x1x8xf32>
    tpu.vector_store %arg8[%c0_16, %c0_17, %c0_18], %24 {strides = array<i32>} : memref<1x1x8xf32, #tpu.memory_space<vmem>>, vector<1x1x8xf32>,
    return
  }
  func.func @transform_0(%arg0: i32) -> (i32, i32) {
    %c0_i32 = arith.constant 0 : i32
    %c0_i32_0 = arith.constant 0 : i32
    return %arg0, %c0_i32 : i32, i32
  }
  func.func @transform_1(%arg0: i32) -> (i32, i32) {
    %c0_i32 = arith.constant 0 : i32
    %c0_i32_0 = arith.constant 0 : i32
    %c0_i32_1 = arith.constant 0 : i32
    return %c0_i32, %c0_i32_0 : i32, i32
  }
  func.func @transform_2(%arg0: i32) -> (i32, i32) {
    %c0_i32 = arith.constant 0 : i32
    %c0_i32_0 = arith.constant 0 : i32
    %c0_i32_1 = arith.constant 0 : i32
    return %c0_i32, %c0_i32_0 : i32, i32
  }
  func.func @transform_3(%arg0: i32) -> (i32, i32) {
    %c0_i32 = arith.constant 0 : i32
    %c0_i32_0 = arith.constant 0 : i32
    %c0_i32_1 = arith.constant 0 : i32
    return %c0_i32, %c0_i32_0 : i32, i32
  }
  func.func @transform_4(%arg0: i32) -> (i32, i32) {
    %c0_i32 = arith.constant 0 : i32
    %c0_i32_0 = arith.constant 0 : i32
    %c0_i32_1 = arith.constant 0 : i32
    return %c0_i32, %c0_i32_0 : i32, i32
  }
  func.func @transform_5(%arg0: i32) -> (i32, i32) {
    %c0_i32 = arith.constant 0 : i32
    %c0_i32_0 = arith.constant 0 : i32
    %c0_i32_1 = arith.constant 0 : i32
    return %c0_i32, %c0_i32_0 : i32, i32
  }
  func.func @transform_6(%arg0: i32) -> i32 {
    %c0_i32 = arith.constant 0 : i32
    %c0_i32_0 = arith.constant 0 : i32
    return %c0_i32 : i32
  }
  func.func @transform_7(%arg0: i32) -> (i32, i32, i32) {
    %c0_i32 = arith.constant 0 : i32
    %c0_i32_0 = arith.constant 0 : i32
    %c0_i32_1 = arith.constant 0 : i32
    return %arg0, %c0_i32, %c0_i32_0 : i32, i32, i32
  }
}

</mosaic_0001>

<bundles_post_ra>
// kernel: tpu_custom_call.1
= control target key start
LH: loop header
LB: loop body
LE: loop exit
PB: predicated region body
PF: predicated region fallthrough
CT: control target
= control target key end

     0   :  { %13 = vsyncpa [#allocation4], 0  ;;  %s604_s0 = inlined_call_operand.hbm [shape: f32[8,32], index: 0, kind: input, shape index: {}]   ;;  %s605_s1 = inlined_call_operand.hbm [shape: bf16[32,128], index: 1, kind: input, shape index: {}]   ;;  %s606_s2 = inlined_call_operand.vmem [shape: f32[1,128], index: 2, kind: input, shape index: {}]   ;;  %s607_s3 = inlined_call_operand.hbm [shape: bf16[128,128], index: 3, kind: input, shape index: {}]   ;;  %s608_s4 = inlined_call_operand.vmem [shape: f32[1,128], index: 4, kind: input, shape index: {}]   ;;  %s609_s5 = inlined_call_operand.vmem [shape: bf16[8,128], index: 5, kind: input, shape index: {}]   ;;  %s610_s6 = inlined_call_operand.<no memory space> [shape: f32[1], index: 6, kind: input, shape index: {}]   ;;  %s611_s7 = inlined_call_operand.hbm [shape: f32[1,1,8], index: 7, kind: output, shape index: {}]  }
   0x1   :  { %14 = vsyncpa [#allocation7], 0 }
   0x2   :  { %15 = vsyncpa [#allocation5], 0  ;;  %s487_s24 = smov [#allocation6]   ;;  %s393_s28 = scalar_lea.hbm %s605_s1, 256 }
   0x3   :  { %s31_s25 = sshll.u32 %s487_s24, 4  ;;  %p394_p0 = scmp.ne.s32.totalorder %s605_s1, %s393_s28  ;;  %s32_s25 = int_to_ptr.vmem [resolvable:$true] %s31_s25 }
   0x4   :  { %p397_p1 = scmp.lt.u32.totalorder %s393_s28, %s605_s1 }
   0x6   :  { %p399_p2 = pnand %p397_p1, %p394_p0 }
   0x8   :  { %402 = shalt.err (!%p399_p2)
}
   0x9   :  { %s403_s10 = scalar_lea.vmem %s32_s25, 256  ;;  %p408_p4 = scmp.lt.s32.totalorder %s32_s25, %s32_s25 }
   0xa   :  { %p404_p3 = scmp.ne.s32.totalorder %s32_s25, %s403_s10  ;;  %p409_p5 = scmp.lt.s32.totalorder %s403_s10, %s403_s10 }
   0xc   :  { %p410_p6 = por %p409_p5, %p408_p4 }
   0xe   :  { %p411_p7 = pnand %p410_p6, %p404_p3 }
  0x10   :  { %414 = shalt.err (!%p411_p7)
}
  0x11   :  { %s488_s11 = smov 64   ;;  %s489_s12 = smov 4  }
  0x12   :  { %37 = dma.hbm_to_vmem [thread:$0]  %s605_s1, 256, %s32_s25, [#allocation7], %s488_s11, %s488_s11, %s489_s12  }
  0x13   :  { %s490_s15 = smov [#allocation3]   ;;  %s491_s17 = smov [#allocation8]  }
  0x14   :  { %s22_s16 = sshll.u32 %s490_s15, 4  ;;  %s45_s18 = sshll.u32 %s491_s17, 4  ;;  %s23_s16 = int_to_ptr.vmem [resolvable:$true] %s22_s16  ;;  %s46_s18 = int_to_ptr.vmem [resolvable:$true] %s45_s18 }
  0x15   :  { %s415_s21 = scalar_lea.hbm %s604_s0, 128 }
  0x16   :  { %p416_p8 = scmp.ne.s32.totalorder %s604_s0, %s415_s21  ;;  %p419_p9 = scmp.lt.u32.totalorder %s415_s21, %s604_s0 }
  0x18   :  { %p421_p10 = pnand %p419_p9, %p416_p8 }
  0x1a   :  { %424 = shalt.err (!%p421_p10)
}
  0x1b   :  { %s425_s1 = scalar_lea.vmem %s23_s16, 128  ;;  %p430_p12 = scmp.lt.s32.totalorder %s23_s16, %s23_s16 }
  0x1c   :  { %p426_p11 = scmp.ne.s32.totalorder %s23_s16, %s425_s1  ;;  %p431_p13 = scmp.lt.s32.totalorder %s425_s1, %s425_s1 }
  0x1e   :  { %p432_p0 = por %p431_p13, %p430_p12 }
  0x20   :  { %p433_p1 = pnand %p432_p0, %p426_p11 }
  0x22   :  { %436 = shalt.err (!%p433_p1)
}
  0x23   :  { %25 = dma.hbm_to_vmem [thread:$0]  %s604_s0, 128, %s23_s16, [#allocation4]  }
  0x24   :  { %s437_s30 = scalar_lea.hbm %s607_s3, 1024 }
  0x25   :  { %p438_p2 = scmp.ne.s32.totalorder %s607_s3, %s437_s30  ;;  %p441_p3 = scmp.lt.u32.totalorder %s437_s30, %s607_s3 }
  0x27   :  { %p443_p4 = pnand %p441_p3, %p438_p2 }
  0x29   :  { %446 = shalt.err (!%p443_p4)
}
  0x2a   :  { %s447_s14 = scalar_lea.vmem %s46_s18, 1024  ;;  %p452_p6 = scmp.lt.s32.totalorder %s46_s18, %s46_s18 }
  0x2b   :  { %p448_p5 = scmp.ne.s32.totalorder %s46_s18, %s447_s14  ;;  %p453_p7 = scmp.lt.s32.totalorder %s447_s14, %s447_s14 }
  0x2d   :  { %p454_p8 = por %p453_p7, %p452_p6 }
  0x2f   :  { %p455_p9 = pnand %p454_p8, %p448_p5 }
  0x31   :  { %458 = shalt.err (!%p455_p9)
}
  0x32   :  { %51 = dma.hbm_to_vmem [thread:$0]  %s607_s3, 1024, %s46_s18, [#allocation7], %s488_s11, %s488_s11, %s489_s12  }
  0x33   :  { %481 = dma.done.wait [#allocation4], 128  }
  0x34   :  { %482 = vsyncadd [#allocation4], 4294967168 }
  0x35   :  { %483 = dma.done.wait [#allocation7], 1280  }
  0x36   :  { %484 = vsyncadd [#allocation7], 4294966016  ;;  %v492_v0 = vmov 0.0   ;;  %vm493_vm0 = vmmov 0   ;;  %v383_v1 = vld [vmem:[#allocation6] sm:$0xff]   ;;  %v384_v2 = vld [vmem:[#allocation6 + $0x8] sm:$0xff]   ;;  %v294_v30 = vstv %s610_s6 }
  0x37   :  { %341 = vmatprep.subr.bf16.mxu0 %v492_v0  ;;  %345 = vmatprep.mubr.msk.bf16.mxu0 %vm493_vm0, %v492_v0  ;;  %v68_v3 = vld [vmem:[#allocation3] sm:$0xff]  ;;  %v385_v4 = vld [vmem:[#allocation8] sm:$0xff]   ;;  %vm93_vm1 = vcmask 261120   ;;  %v387_v7 = vld [vmem:[#allocation8 + $0x10] sm:$0xff]   ;;  %s494_s20 = smov [#allocation9]   ;;  %vm296_vm2 = vcmask 57344  }
  0x38   :  { %349 = vmatprep.subr.bf16.mxu1 %v492_v0  ;;  %365 = vmatprep.mubr.msk.bf16.mxu1 %vm493_vm0, %v492_v0  ;;  %v69_v5 = vpack.c.bf16 %v68_v3, %v68_v3  ;;  %v386_v6 = vld [vmem:[#allocation8 + $0x8] sm:$0xff]   ;;  %v388_v8 = vld [vmem:[#allocation8 + $0x18] sm:$0xff]   ;;  %v389_v9 = vld [vmem:[#allocation8 + $0x20] sm:$0xff]   ;;  %s304_s21 = sshll.u32 %s494_s20, 4  ;;  %s305_s21 = int_to_ptr.vmem [resolvable:$true] %s304_s21 }
  0x39   :  { %342 = vmatpush3.bf16.msra.mxu0 %v383_v1  ;;  %350 = vmatpush3.bf16.msra.mxu1 %v385_v4  ;;  %v390_v10 = vld [vmem:[#allocation8 + $0x28] sm:$0xff]   ;;  %v391_v11 = vld [vmem:[#allocation8 + $0x30] sm:$0xff]   ;;  %v392_v12 = vld [vmem:[#allocation8 + $0x38] sm:$0xff]   ;;  %s463_s22 = scalar_lea.vmem %s305_s21, 32  ;;  %p464_p11 = scmp.lt.s32.totalorder %s305_s21, %s305_s21 }
  0x3a   :  { %343 = vmatprep.subr.bf16.mxu0 %v492_v0  ;;  %351 = vmatprep.subr.bf16.mxu1 %v492_v0  ;;  %v314_v13 = vld [vmem:[%s606_s2] ss:$0 sm:$0xff] }
  0x3b   :  { %v318_v21 = vld [vmem:[%s608_s4] ss:$0 sm:$0xff]  ;;  %s459_s4 = scalar_lea.vmem %s305_s21, 16 }
  0x3c   :  { %v251_v29 = vld [vmem:[%s609_s5] sm:$0xf]  ;;  %p460_p10 = scmp.ne.s32.totalorder %s305_s21, %s459_s4  ;;  %p465_p12 = scmp.lt.s32.totalorder %s463_s22, %s459_s4 }
  0x3d   :  { %344 = vmatpush3.bf16.msra.mxu0 %v384_v2  ;;  %352 = vmatpush3.bf16.msra.mxu1 %v386_v6 }
  0x3e   :  { %369 = vmatprep.subr.bf16.mxu0 %v492_v0  ;;  %353 = vmatprep.subr.bf16.mxu1 %v492_v0  ;;  %p466_p13 = por %p465_p12, %p464_p11 }
  0x40   :  { %346 = vmatmul.mubr.msk.bf16.vlgmr.msra.gmra.mrb[0].mxu0 %vm93_vm1, %v69_v5  ;;  %p467_p0 = pnand %p466_p13, %p460_p10 }
  0x41   :  { %371 = vmatprep.mubr.msk.bf16.mxu0 %vm493_vm0, %v492_v0  ;;  %354 = vmatpush3.bf16.msra.mxu1 %v387_v7 }
  0x42   :  { %355 = vmatprep.subr.bf16.mxu1 %v492_v0 }
  0x45   :  { %356 = vmatpush3.bf16.msra.mxu1 %v388_v8 }
  0x46   :  { %357 = vmatprep.subr.bf16.mxu1 %v492_v0 }
  0x49   :  { %358 = vmatpush3.bf16.msra.mxu1 %v389_v9 }
  0x4a   :  { %359 = vmatprep.subr.bf16.mxu1 %v492_v0 }
  0x4d   :  { %360 = vmatpush3.bf16.msra.mxu1 %v390_v10 }
  0x4e   :  { %361 = vmatprep.subr.bf16.mxu1 %v492_v0 }
  0x51   :  { %362 = vmatpush3.bf16.msra.mxu1 %v391_v11 }
  0x52   :  { %363 = vmatprep.subr.bf16.mxu1 %v492_v0 }
  0x55   :  { %364 = vmatpush3.bf16.msra.mxu1 %v392_v12 }
 0x113   :  { %v131_v14 = vpop.f32.mrb[0].mxu0 }
 0x114   :  { %v132_v15 = vadd.f32 %v314_v13, %v131_v14  ;;  %v347_v16 = vpop.f32.mrb[1].mxu0 }
 0x115   :  { %v134_v17 = vpop.f32.mrb[2].mxu0 }
 0x116   :  { %v137_v18 = vmax.f32 %v132_v15, 0.0  ;;  %v348_v19 = vpop.f32.mrb[3].mxu0 }
 0x118   :  { %v138_v20 = vpack.c.bf16 %v137_v18, %v137_v18 }
 0x11a   :  { %366 = vmatmul.mubr.bf16.vlgmr.msra.gmra.mrb[0].mxu1 %v138_v20 }
 0x1ed   :  { %v244_v22 = vpop.f32.mrb[0].mxu1 }
 0x1ee   :  { %v245_v23 = vadd.f32 %v318_v21, %v244_v22  ;;  %v367_v24 = vpop.f32.mrb[1].mxu1 }
 0x1ef   :  { %v247_v25 = vpop.f32.mrb[2].mxu1 }
 0x1f0   :  { %v250_v26 = vmax.f32 %v245_v23, 0.0  ;;  %v368_v27 = vpop.f32.mrb[3].mxu1 }
 0x1f2   :  { %v252_v28 = vpack.c.bf16 %v250_v26, %v250_v26 }
 0x1f4   :  { %370 = vmatpush3.bf16.xpose.msra.mxu0 %v252_v28 }
 0x1fb   :  { %372 = vmatmul.mubr.bf16.vlgmr.msra.gmra.mrb[4].mxu0 %v251_v29 }
 0x2ce   :  { %v287_v31 = vpop.f32.mrb[4].mxu0 }
 0x2cf   :  { %v295_v32 = vadd.f32 %v294_v30, %v287_v31  ;;  %v373_v33 = vpop.f32.mrb[5].mxu0 }
 0x2d0   :  { %v290_v34 = vpop.f32.mrb[6].mxu0 }
 0x2d1   :  { %v374_v35 = vpop.f32.mrb[7].mxu0  ;;  %297 = vst.msk [vmem:[#allocation9] sm:$0x1] %vm296_vm2, %v295_v32 }
 0x2d2   :  { %470 = shalt.err (!%p467_p0)
}
 0x2d3   :  { %s471_s23 = scalar_lea.hbm %s611_s7, 16 }
 0x2d4   :  { %p472_p1 = scmp.ne.s32.totalorder %s611_s7, %s471_s23  ;;  %p475_p2 = scmp.lt.u32.totalorder %s471_s23, %s611_s7 }
 0x2d6   :  { %p477_p3 = pnand %p475_p2, %p472_p1 }
 0x2d8   :  { %480 = shalt.err (!%p477_p3)
}
 0x2d9   :  { %307 = dma.vmem_to_hbm [thread:$0]  %s305_s21, 16, %s611_s7, [#allocation5]  }
 0x2da   :  { %485 = dma.done.wait [#allocation5], 16  }
 0x2db   :  { %486 = vsyncadd [#allocation5], 4294967280 }
 0x2dc   :  { %311 = vsyncpa [#allocation4], 1 }
 0x2dd   :  { %312 = vsyncpa [#allocation7], 1 }
 0x2de   :  { %313 = vsyncpa [#allocation5], 1 }

</bundles_post_ra>
